<compile_context>
chip_gen: v5e
topology: v5e:2x2
jax: 0.10.0
libtpu: 0.0.40
codegen_flags: <defaults>
</compile_context>

<pallas_src>
import jax
import jax.numpy as jnp
from jax.experimental import pallas as pl
from jax.experimental.pallas import tpu as pltpu


def _round_up(x, m):
    return ((x + m - 1) // m) * m


def _feat_classifier_two_kernel(x_ref, w0_ref, b0_ref, w1_ref, b1_ref, out_ref):
    # fc0: (TB, D_in) @ (D_in, D_bn), bf16 operands, f32 MXU accumulation.
    x = x_ref[...].astype(w0_ref.dtype)
    h = jnp.dot(x, w0_ref[...], preferred_element_type=jnp.float32)
    h = h + b0_ref[...]
    # fc1: (TB, D_bn) @ (D_bn, C_pad). Casting h down to the weight dtype keeps
    # the second matmul on the fast MXU path and bounds vreg pressure on h.
    y = jnp.dot(h.astype(w1_ref.dtype), w1_ref[...],
                preferred_element_type=jnp.float32)
    y = y + b1_ref[...]
    out_ref[...] = y.astype(out_ref.dtype)


def feat_classifier_two(x, w0, b0, w1, b1, *, block_b=256, use_bf16=True):
    """Pallas forward of feat_classifier_two.

    x  : (B, input_dim)
    w0 : (input_dim, bottleneck_dim)   (transposed vs PyTorch layout)
    b0 : (bottleneck_dim,)
    w1 : (bottleneck_dim, class_num)   (transposed vs PyTorch layout)
    b1 : (class_num,)
    returns (B, class_num)
    """
    B, D_in = x.shape
    D_bn = w0.shape[1]
    C = w1.shape[1]
    out_dtype = x.dtype

    # Lane-dense padding: every contraction / output dim rounded to 128 with
    # zero columns/rows (mathematically a no-op; sliced off at the end).
    D_in_p = max(128, _round_up(D_in, 128))
    D_bn_p = max(128, _round_up(D_bn, 128))
    C_pad = max(128, _round_up(C, 128))

    if D_in_p != D_in:
        x = jnp.pad(x, ((0, 0), (0, D_in_p - D_in)))
        w0 = jnp.pad(w0, ((0, D_in_p - D_in), (0, 0)))
    if D_bn_p != D_bn:
        w0 = jnp.pad(w0, ((0, 0), (0, D_bn_p - D_bn)))
        b0 = jnp.pad(b0, (0, D_bn_p - D_bn))
        w1 = jnp.pad(w1, ((0, D_bn_p - D_bn), (0, 0)))
    if C_pad != C:
        w1 = jnp.pad(w1, ((0, 0), (0, C_pad - C)))
        b1 = jnp.pad(b1, (0, C_pad - C))

    # Batch tile: multiple of 8 sublanes, capped at block_b; pad B to a
    # multiple of the tile so every block is full.
    TB = min(block_b, _round_up(B, 8))
    B_pad = _round_up(B, TB)
    if B_pad != B:
        x = jnp.pad(x, ((0, B_pad - B), (0, 0)))

    w_dtype = jnp.bfloat16 if use_bf16 else x.dtype
    w0 = w0.astype(w_dtype)
    w1 = w1.astype(w_dtype)
    b0_2d = b0.reshape(1, D_bn_p).astype(jnp.float32)
    b1_2d = b1.reshape(1, C_pad).astype(jnp.float32)

    grid = (B_pad // TB,)

    # TODO(synk): when D_in * C is much smaller than D_in*D_bn + D_bn*C the two
    # GEMMs could be pre-folded into one in the wrapper; kept as two matmuls to
    # preserve the module's exact forward semantics.
    out = pl.pallas_call(
        _feat_classifier_two_kernel,
        out_shape=jax.ShapeDtypeStruct((B_pad, C_pad), out_dtype),
        grid_spec=pltpu.PrefetchScalarGridSpec(
            num_scalar_prefetch=0,
            grid=grid,
            in_specs=[
                pl.BlockSpec((TB, D_in_p), lambda i: (i, 0)),    # x: tiled over B
                pl.BlockSpec((D_in_p, D_bn_p), lambda i: (0, 0)),  # w0: resident
                pl.BlockSpec((1, D_bn_p), lambda i: (0, 0)),     # b0: resident
                pl.BlockSpec((D_bn_p, C_pad), lambda i: (0, 0)),  # w1: resident
                pl.BlockSpec((1, C_pad), lambda i: (0, 0)),      # b1: resident
            ],
            out_specs=pl.BlockSpec((TB, C_pad), lambda i: (i, 0)),
        ),
        compiler_params=pltpu.CompilerParams(
            # B-tiles are independent -> shard across both TCs on v7x.
            dimension_semantics=("parallel",),
            vmem_limit_bytes=64 * 1024 * 1024,
        ),
    )(x, w0, b0_2d, w1, b1_2d)

    return out[:B, :C]


def init_params(key, input_dim, bottleneck_dim, class_num):
    """Deterministic init mirroring init_weights: xavier_normal_ for Linear
    weights, zeros for biases."""
    k0, k1 = jax.random.split(key)
    std0 = (2.0 / (input_dim + bottleneck_dim)) ** 0.5
    std1 = (2.0 / (bottleneck_dim + class_num)) ** 0.5
    # PyTorch Linear weight is (out, in); store transposed (in, out) for kernel.
    w0 = (jax.random.normal(k0, (bottleneck_dim, input_dim), jnp.float32) * std0).T
    b0 = jnp.zeros((bottleneck_dim,), jnp.float32)
    w1 = (jax.random.normal(k1, (class_num, bottleneck_dim), jnp.float32) * std1).T
    b1 = jnp.zeros((class_num,), jnp.float32)
    return w0, b0, w1, b1


if __name__ == "__main__":
    key = jax.random.PRNGKey(0)
    kx, kp = jax.random.split(key)

    B = 8
    input_dim = 32
    bottleneck_dim = 256
    class_num = 16

    x = jax.random.normal(kx, (B, input_dim), jnp.float32)
    w0, b0, w1, b1 = init_params(kp, input_dim, bottleneck_dim, class_num)

    out = feat_classifier_two(x, w0, b0, w1, b1)
    out = jax.block_until_ready(out)
    assert out.shape == (B, class_num)

    # Reference matching the kernel's bf16-operand / f32-accumulate math.
    xb = x.astype(jnp.bfloat16)
    h_ref = jnp.dot(xb, w0.astype(jnp.bfloat16),
                    preferred_element_type=jnp.float32) + b0
    ref_bf16 = jnp.dot(h_ref.astype(jnp.bfloat16), w1.astype(jnp.bfloat16),
                       preferred_element_type=jnp.float32) + b1
    assert jnp.allclose(out, ref_bf16, atol=1e-2, rtol=1e-2)

    # Sanity vs. full-f32 reference (bf16 MXU operands are a deliberate,
    # bounded precision trade-off).
    ref_f32 = (x @ w0 + b0) @ w1 + b1
    assert jnp.allclose(out, ref_f32, atol=5e-2, rtol=5e-2)

    print("KERNEL_OK")
</pallas_src>

<mosaic_0001>
module attributes {stable_mosaic.version = 11 : i64} {
  func.func @_feat_classifier_two_kernel(%arg0: i32, %arg1: memref<8x128xf32, #tpu.memory_space<vmem>>, %arg2: memref<128x256xbf16, #tpu.memory_space<vmem>>, %arg3: memref<1x256xf32, #tpu.memory_space<vmem>>, %arg4: memref<256x128xbf16, #tpu.memory_space<vmem>>, %arg5: memref<1x128xf32, #tpu.memory_space<vmem>>, %arg6: memref<8x128xf32, #tpu.memory_space<vmem>>) attributes {dimension_semantics = [#tpu.dimension_semantics<parallel>], iteration_bounds = array<i64: 1>, scalar_prefetch = 0 : i64, scratch_operands = 0 : i64, tpu.core_type = #tpu.core_type<tc>, window_params = [{transform_indices = @transform_0, window_bounds = array<i64: 8, 128>}, {pipeline_mode = #tpu.pipeline_mode<synchronous>, transform_indices = @transform_1, window_bounds = array<i64: 128, 256>}, {pipeline_mode = #tpu.pipeline_mode<synchronous>, transform_indices = @transform_2, window_bounds = array<i64: 1, 256>}, {pipeline_mode = #tpu.pipeline_mode<synchronous>, transform_indices = @transform_3, window_bounds = array<i64: 256, 128>}, {pipeline_mode = #tpu.pipeline_mode<synchronous>, transform_indices = @transform_4, window_bounds = array<i64: 1, 128>}, {transform_indices = @transform_5, window_bounds = array<i64: 8, 128>}]} {
    %c0 = arith.constant 0 : index
    %c0_0 = arith.constant 0 : index
    %0 = vector.load %arg1[%c0, %c0_0] : memref<8x128xf32, #tpu.memory_space<vmem>>, vector<8x128xf32>
    %1 = arith.truncf %0 : vector<8x128xf32> to vector<8x128xbf16>
    %c0_1 = arith.constant 0 : index
    %c0_2 = arith.constant 0 : index
    %2 = vector.load %arg2[%c0_1, %c0_2] : memref<128x256xbf16, #tpu.memory_space<vmem>>, vector<128x256xbf16>
    %cst = arith.constant dense<0.000000e+00> : vector<8x256xf32>
    %3 = tpu.matmul %1, %2, %cst {dimension_numbers = #tpu.dot_dimension_numbers<[1], [0], [0], [1], [0, 0, 1, 1], [], []>} : vector<8x128xbf16>, vector<128x256xbf16>, vector<8x256xf32> -> vector<8x256xf32>
    %c0_3 = arith.constant 0 : index
    %c0_4 = arith.constant 0 : index
    %4 = vector.load %arg3[%c0_3, %c0_4] : memref<1x256xf32, #tpu.memory_space<vmem>>, vector<1x256xf32>
    %5 = vector.broadcast %4 : vector<1x256xf32> to vector<8x256xf32>
    %6 = arith.addf %3, %5 : vector<8x256xf32>
    %7 = arith.truncf %6 : vector<8x256xf32> to vector<8x256xbf16>
    %c0_5 = arith.constant 0 : index
    %c0_6 = arith.constant 0 : index
    %8 = vector.load %arg4[%c0_5, %c0_6] : memref<256x128xbf16, #tpu.memory_space<vmem>>, vector<256x128xbf16>
    %cst_7 = arith.constant dense<0.000000e+00> : vector<8x128xf32>
    %9 = tpu.matmul %7, %8, %cst_7 {dimension_numbers = #tpu.dot_dimension_numbers<[1], [0], [0], [1], [0, 0, 1, 1], [], []>} : vector<8x256xbf16>, vector<256x128xbf16>, vector<8x128xf32> -> vector<8x128xf32>
    %c0_8 = arith.constant 0 : index
    %c0_9 = arith.constant 0 : index
    %10 = vector.load %arg5[%c0_8, %c0_9] : memref<1x128xf32, #tpu.memory_space<vmem>>, vector<1x128xf32>
    %11 = vector.broadcast %10 : vector<1x128xf32> to vector<8x128xf32>
    %12 = arith.addf %9, %11 : vector<8x128xf32>
    %c0_10 = arith.constant 0 : index
    %c0_11 = arith.constant 0 : index
    %13 = vector.load %arg6[%c0_10, %c0_11] : memref<8x128xf32, #tpu.memory_space<vmem>>, vector<8x128xf32>
    tpu.vector_store %arg6[%c0_10, %c0_11], %12 {strides = array<i32>} : memref<8x128xf32, #tpu.memory_space<vmem>>, vector<8x128xf32>,
    return
  }
  func.func @transform_0(%arg0: i32) -> (i32, i32) {
    %c0_i32 = arith.constant 0 : i32
    %c0_i32_0 = arith.constant 0 : i32
    return %arg0, %c0_i32 : i32, i32
  }
  func.func @transform_1(%arg0: i32) -> (i32, i32) {
    %c0_i32 = arith.constant 0 : i32
    %c0_i32_0 = arith.constant 0 : i32
    %c0_i32_1 = arith.constant 0 : i32
    return %c0_i32, %c0_i32_0 : i32, i32
  }
  func.func @transform_2(%arg0: i32) -> (i32, i32) {
    %c0_i32 = arith.constant 0 : i32
    %c0_i32_0 = arith.constant 0 : i32
    %c0_i32_1 = arith.constant 0 : i32
    return %c0_i32, %c0_i32_0 : i32, i32
  }
  func.func @transform_3(%arg0: i32) -> (i32, i32) {
    %c0_i32 = arith.constant 0 : i32
    %c0_i32_0 = arith.constant 0 : i32
    %c0_i32_1 = arith.constant 0 : i32
    return %c0_i32, %c0_i32_0 : i32, i32
  }
  func.func @transform_4(%arg0: i32) -> (i32, i32) {
    %c0_i32 = arith.constant 0 : i32
    %c0_i32_0 = arith.constant 0 : i32
    %c0_i32_1 = arith.constant 0 : i32
    return %c0_i32, %c0_i32_0 : i32, i32
  }
  func.func @transform_5(%arg0: i32) -> (i32, i32) {
    %c0_i32 = arith.constant 0 : i32
    %c0_i32_0 = arith.constant 0 : i32
    return %arg0, %c0_i32 : i32, i32
  }
}

</mosaic_0001>

<bundles_post_ra>
// kernel: tpu_custom_call.1
= control target key start
LH: loop header
LB: loop body
LE: loop exit
PB: predicated region body
PF: predicated region fallthrough
CT: control target
= control target key end

     0   :  { %10 = vsyncpa [#allocation3], 0  ;;  %s745_s0 = inlined_call_operand.hbm [shape: f32[8,128], index: 0, kind: input, shape index: {}]   ;;  %s746_s1 = inlined_call_operand.hbm [shape: bf16[128,256], index: 1, kind: input, shape index: {}]   ;;  %s747_s2 = inlined_call_operand.hbm [shape: f32[1,256], index: 2, kind: input, shape index: {}]   ;;  %s748_s3 = inlined_call_operand.hbm [shape: bf16[256,128], index: 3, kind: input, shape index: {}]   ;;  %s749_s4 = inlined_call_operand.vmem [shape: f32[1,128], index: 4, kind: input, shape index: {}]   ;;  %s750_s5 = inlined_call_operand.hbm [shape: f32[8,128], index: 5, kind: output, shape index: {}]  }
   0x1   :  { %11 = vsyncpa [#allocation6], 0 }
   0x2   :  { %12 = vsyncpa [#allocation9], 0  ;;  %s29_s20 = sshll.u32 %s746_s1, 4  ;;  %s30_s20 = int_to_ptr.hbm [resolvable:$true] %s29_s20 }
   0x3   :  { %13 = vsyncpa [#allocation4], 0  ;;  %s688_s21 = smov [#allocation5]   ;;  %s19_s25 = sshll.u32 %s745_s0, 4  ;;  %s20_s25 = int_to_ptr.hbm [resolvable:$true] %s19_s25 }
   0x4   :  { %s31_s22 = sshll.u32 %s688_s21, 4  ;;  %s689_s26 = smov 128   ;;  %s32_s22 = int_to_ptr.vmem [resolvable:$true] %s31_s22 }
   0x5   :  { %s690_s27 = smov 8   ;;  %s691_s28 = smov [#allocation2]  }
   0x6   :  { %37 = dma.hbm_to_vmem [thread:$0]  %s30_s20, 2048, %s32_s22, [#allocation6], %s689_s26, %s689_s26, %s690_s27  }
   0x7   :  { %s21_s29 = sshll.u32 %s691_s28, 4  ;;  %s43_s7 = sshll.u32 %s747_s2, 4  ;;  %s22_s29 = int_to_ptr.vmem [resolvable:$true] %s21_s29  ;;  %s44_s7 = int_to_ptr.hbm [resolvable:$true] %s43_s7 }
   0x8   :  { %24 = dma.hbm_to_vmem [thread:$0]  %s20_s25, 128, %s22_s29, [#allocation3]  }
   0x9   :  { %s53_s9 = sshll.u32 %s748_s3, 4  ;;  %s692_s10 = smov [#allocation7]   ;;  %s54_s9 = int_to_ptr.hbm [resolvable:$true] %s53_s9 }
   0xa   :  { %s45_s11 = sshll.u32 %s692_s10, 4  ;;  %s693_s0 = smov [#allocation8]   ;;  %s46_s11 = int_to_ptr.vmem [resolvable:$true] %s45_s11 }
   0xb   :  { %48 = dma.hbm_to_vmem [thread:$0]  %s44_s7, 32, %s46_s11, [#allocation6]  }
   0xc   :  { %s55_s12 = sshll.u32 %s693_s0, 4  ;;  %s694_s13 = smov 64   ;;  %s56_s12 = int_to_ptr.vmem [resolvable:$true] %s55_s12 }
   0xd   :  { %s695_s14 = smov 4  }
   0xe   :  { %61 = dma.hbm_to_vmem [thread:$0]  %s54_s9, 2048, %s56_s12, [#allocation9], %s694_s13, %s694_s13, %s695_s14  }
   0xf   :  { %680 = dma.done.wait [#allocation3], 128  }
  0x10   :  { %681 = vsyncadd [#allocation3], 4294967168 }
  0x11   :  { %682 = dma.done.wait [#allocation6], 2080  }
  0x12   :  { %683 = vsyncadd [#allocation6], 4294965216 }
  0x13   :  { %684 = dma.done.wait [#allocation9], 2048  }
  0x14   :  { %685 = vsyncadd [#allocation9], 4294965248  ;;  %v448_v0 = vld [vmem:[#allocation5 + $0x70] sm:$0xf]  ;;  %v533_v1 = vld [vmem:[#allocation5 + $0x74] sm:$0xf0] }
  0x15   :  { %v532_v2 = vld [vmem:[#allocation5 + $0x74] sm:$0xf]  ;;  %v449_v3 = vor.u32 %v533_v1, %v448_v0  ;;  %v450_v4 = vld [vmem:[#allocation5 + $0x78] sm:$0xf0]  ;;  %v440_v5 = vld [vmem:[#allocation5 + $0x60] sm:$0xf] }
  0x16   :  { %v531_v6 = vld [vmem:[#allocation5 + $0x64] sm:$0xf0]  ;;  %v453_v7 = vor.u32 %v532_v2, %v450_v4  ;;  %v530_v8 = vld [vmem:[#allocation5 + $0x64] sm:$0xf]  ;;  %v442_v9 = vld [vmem:[#allocation5 + $0x68] sm:$0xf0] }
  0x17   :  { %184 = vmatpush.bf16.msra.mxu0 %v449_v3  ;;  %v441_v10 = vor.u32 %v531_v6, %v440_v5  ;;  %v445_v11 = vor.u32 %v530_v8, %v442_v9  ;;  %v432_v12 = vld [vmem:[#allocation5 + $0x50] sm:$0xf]  ;;  %v529_v13 = vld [vmem:[#allocation5 + $0x54] sm:$0xf0]  ;;  %v528_v14 = vld [vmem:[#allocation5 + $0x54] sm:$0xf] }
  0x18   :  { %197 = vmatpush.bf16.msra.mxu1 %v453_v7  ;;  %v434_v15 = vld [vmem:[#allocation5 + $0x58] sm:$0xf0]  ;;  %v433_v16 = vor.u32 %v529_v13, %v432_v12  ;;  %v424_v18 = vld [vmem:[#allocation5 + $0x40] sm:$0xf]  ;;  %v527_v19 = vld [vmem:[#allocation5 + $0x44] sm:$0xf0] }
  0x19   :  { %v437_v17 = vor.u32 %v528_v14, %v434_v15  ;;  %v526_v20 = vld [vmem:[#allocation5 + $0x44] sm:$0xf]  ;;  %v426_v21 = vld [vmem:[#allocation5 + $0x48] sm:$0xf0]  ;;  %v425_v22 = vor.u32 %v527_v19, %v424_v18  ;;  %v541_v23 = vld [vmem:[#allocation8 + $0x38] sm:$0xff]  ;;  %s696_s15 = smov [#allocation10]  }
  0x1a   :  { %v549_v24 = vld [vmem:[#allocation8 + $0x78] sm:$0xff]  ;;  %v429_v25 = vor.u32 %v526_v20, %v426_v21  ;;  %v416_v26 = vld [vmem:[#allocation5 + $0x30] sm:$0xf]  ;;  %v524_v28 = vld [vmem:[#allocation5 + $0x34] sm:$0xf]  ;;  %344 = vmatpush.bf16.msra.mxu2 %v541_v23  ;;  %s376_s16 = sshll.u32 %s696_s15, 4  ;;  %s377_s16 = int_to_ptr.vmem [resolvable:$true] %s376_s16 }
  0x1b   :  { %185 = vmatpush.bf16.msra.mxu0 %v441_v10  ;;  %v525_v27 = vld [vmem:[#allocation5 + $0x34] sm:$0xf0]  ;;  %v418_v29 = vld [vmem:[#allocation5 + $0x38] sm:$0xf0]  ;;  %357 = vmatpush.bf16.msra.mxu3 %v549_v24  ;;  %v408_v33 = vld [vmem:[#allocation5 + $0x20] sm:$0xf] }
  0x1c   :  { %198 = vmatpush.bf16.msra.mxu1 %v445_v11  ;;  %v540_v30 = vld [vmem:[#allocation8 + $0x30] sm:$0xff]  ;;  %v417_v32 = vor.u32 %v525_v27, %v416_v26  ;;  %v421_v34 = vor.u32 %v524_v28, %v418_v29  ;;  %v523_v35 = vld [vmem:[#allocation5 + $0x24] sm:$0xf0]  ;;  %v522_v36 = vld [vmem:[#allocation5 + $0x24] sm:$0xf]  ;;  %s378_s19 = sshll.u32 %s750_s5, 4  ;;  %s379_s19 = int_to_ptr.hbm [resolvable:$true] %s378_s19 }
  0x1d   :  { %v548_v31 = vld [vmem:[#allocation8 + $0x70] sm:$0xff]  ;;  %v410_v37 = vld [vmem:[#allocation5 + $0x28] sm:$0xf0]  ;;  %v409_v40 = vor.u32 %v523_v35, %v408_v33  ;;  %v402_v45 = vld [vmem:[#allocation5 + $0x18] sm:$0xf0] }
  0x1e   :  { %345 = vmatpush.bf16.msra.mxu2 %v540_v30  ;;  %v539_v38 = vld [vmem:[#allocation8 + $0x28] sm:$0xff]  ;;  %v413_v41 = vor.u32 %v522_v36, %v410_v37  ;;  %v521_v43 = vld [vmem:[#allocation5 + $0x14] sm:$0xf0]  ;;  %v520_v44 = vld [vmem:[#allocation5 + $0x14] sm:$0xf] }
  0x1f   :  { %186 = vmatpush.bf16.msra.mxu0 %v433_v16  ;;  %358 = vmatpush.bf16.msra.mxu3 %v548_v31  ;;  %v547_v39 = vld [vmem:[#allocation8 + $0x68] sm:$0xff]  ;;  %v538_v46 = vld [vmem:[#allocation8 + $0x20] sm:$0xff]  ;;  %v405_v49 = vor.u32 %v520_v44, %v402_v45  ;;  %v537_v54 = vld [vmem:[#allocation8 + $0x18] sm:$0xff] }
  0x20   :  { %199 = vmatpush.bf16.msra.mxu1 %v437_v17  ;;  %v400_v42 = vld [vmem:[#allocation5 + $0x10] sm:$0xf]  ;;  %v546_v47 = vld [vmem:[#allocation8 + $0x60] sm:$0xff]  ;;  %v394_v53 = vld [vmem:[#allocation5 + $0x8] sm:$0xf0] }
  0x21   :  { %v401_v48 = vor.u32 %v521_v43, %v400_v42  ;;  %v392_v50 = vld [vmem:[#allocation5] sm:$0xf]  ;;  %v519_v51 = vld [vmem:[#allocation5 + $0x4] sm:$0xf0]  ;;  %v518_v52 = vld [vmem:[#allocation5 + $0x4] sm:$0xf] }
  0x22   :  { %346 = vmatpush.bf16.msra.mxu2 %v539_v38  ;;  %v545_v55 = vld [vmem:[#allocation8 + $0x58] sm:$0xff]  ;;  %v393_v56 = vor.u32 %v519_v51, %v392_v50  ;;  %v397_v58 = vor.u32 %v518_v52, %v394_v53  ;;  %v536_v59 = vld [vmem:[#allocation8 + $0x10] sm:$0xff]  ;;  %v535_v62 = vld [vmem:[#allocation8 + $0x8] sm:$0xff] }
  0x23   :  { %187 = vmatpush.bf16.msra.mxu0 %v425_v22  ;;  %359 = vmatpush.bf16.msra.mxu3 %v547_v39  ;;  %v80_v57 = vld [vmem:[#allocation2] sm:$0xff]  ;;  %v543_v63 = vld [vmem:[#allocation8 + $0x48] sm:$0xff]  ;;  %v534_v0 = vld [vmem:[#allocation8] sm:$0xff] }
  0x24   :  { %200 = vmatpush.bf16.msra.mxu1 %v429_v25  ;;  %v544_v60 = vld [vmem:[#allocation8 + $0x50] sm:$0xff]  ;;  %v81_v61 = vpack.c.bf16 %v80_v57, %v80_v57  ;;  %v542_v1 = vld [vmem:[#allocation8 + $0x40] sm:$0xff]  ;;  %v98_v2 = vld [vmem:[#allocation7] sm:$0x3] }
  0x25   :  { %v100_v3 = vperm.slane %v98_v2, 0  ;;  %v101_v4 = vperm.slane %v98_v2, 1  ;;  %v559_v13 = vld [vmem:[%s749_s4] ss:$0 sm:$0xff] }
  0x26   :  { %347 = vmatpush.bf16.msra.mxu2 %v538_v46 }
  0x27   :  { %188 = vmatpush.bf16.msra.mxu0 %v417_v32  ;;  %360 = vmatpush.bf16.msra.mxu3 %v546_v47 }
  0x28   :  { %201 = vmatpush.bf16.msra.mxu1 %v421_v34 }
  0x2a   :  { %348 = vmatpush.bf16.msra.mxu2 %v537_v54 }
  0x2b   :  { %189 = vmatpush.bf16.msra.mxu0 %v409_v40  ;;  %361 = vmatpush.bf16.msra.mxu3 %v545_v55 }
  0x2c   :  { %202 = vmatpush.bf16.msra.mxu1 %v413_v41 }
  0x2e   :  { %349 = vmatpush.bf16.msra.mxu2 %v536_v59 }
  0x2f   :  { %190 = vmatpush.bf16.msra.mxu0 %v401_v48  ;;  %362 = vmatpush.bf16.msra.mxu3 %v544_v60 }
  0x30   :  { %203 = vmatpush.bf16.msra.mxu1 %v405_v49 }
  0x32   :  { %350 = vmatpush.bf16.msra.mxu2 %v535_v62 }
  0x33   :  { %191 = vmatpush.bf16.msra.mxu0 %v393_v56  ;;  %363 = vmatpush.bf16.msra.mxu3 %v543_v63 }
  0x34   :  { %204 = vmatpush.bf16.msra.mxu1 %v397_v58 }
  0x36   :  { %192 = vmatmul.bf16.vlgmr.msra.gmra.mxu0 %v81_v61  ;;  %351 = vmatpush.bf16.msra.mxu2 %v534_v0 }
  0x37   :  { %205 = vmatmul.bf16.vlgmr.msra.gmra.mxu1 %v81_v61  ;;  %364 = vmatpush.bf16.msra.mxu3 %v542_v1 }
  0xb3   :  { %v193_v5 = vpop.f32.mrf.mxu0 }
  0xb4   :  { %v194_v6 = vadd.f32 %v193_v5, %v100_v3  ;;  %v206_v7 = vpop.f32.mrf.mxu1 }
  0xb5   :  { %v207_v8 = vadd.f32 %v206_v7, %v101_v4 }
  0xb6   :  { %v210_v9 = vpack.c.bf16 %v194_v6, %v194_v6 }
  0xb7   :  { %v211_v10 = vpack.c.bf16 %v207_v8, %v207_v8 }
  0xb8   :  { %352 = vmatmul.bf16.vlgmr.msra.gmra.mxu2 %v210_v9 }
  0xb9   :  { %365 = vmatmul.bf16.vlgmr.msra.gmra.mxu3 %v211_v10 }
  0xbb   :  { %v195_v11 = vpop.f32.mrf.mxu0 }
  0xbc   :  { %v208_v12 = vpop.f32.mrf.mxu1 }
 0x13b   :  { %v353_v14 = vpop.f32.mrf.mxu2 }
 0x13c   :  { %v354_v15 = vadd.f32 %v559_v13, %v353_v14  ;;  %v366_v16 = vpop.f32.mrf.mxu3 }
 0x13e   :  { %v367_v17 = vadd.f32 %v366_v16, %v354_v15 }
 0x140   :  { %370 = vst [vmem:[#allocation10] sm:$0xff] %v367_v17 }
 0x141   :  { %381 = dma.vmem_to_hbm [thread:$0]  %s377_s16, 128, %s379_s19, [#allocation4]  }
 0x143   :  { %v355_v18 = vpop.f32.mrf.mxu2 }
 0x144   :  { %v368_v19 = vpop.f32.mrf.mxu3 }
 0x145   :  { %686 = dma.done.wait [#allocation4], 128  }
 0x146   :  { %687 = vsyncadd [#allocation4], 4294967168 }
 0x147   :  { %386 = vsyncpa [#allocation3], 1 }
 0x148   :  { %387 = vsyncpa [#allocation6], 1 }
 0x149   :  { %388 = vsyncpa [#allocation9], 1 }
 0x14a   :  { %389 = vsyncpa [#allocation4], 1 }

</bundles_post_ra>
